<compile_context>
chip_gen: v5e
topology: v5e:2x2
jax: 0.10.0
libtpu: 0.0.40
codegen_flags: <defaults>
</compile_context>

<pallas_src>
import math
from functools import partial

import jax
import jax.numpy as jnp
from jax.experimental import pallas as pl
from jax.experimental.pallas import tpu as pltpu


_TARGET_BLOCK_BYTES = 4 << 20      # ~4 MiB per x block (amortizes ~0.35us/step)
_VMEM_LIMIT_BYTES = 48 << 20       # safe on v5e/v6e (128 MiB) and v7x (64 MiB)
_MEGACORE_SPLIT_BYTES = 2 << 20    # only split a 1-step grid above this size


def make_positional_encoding(d_model, max_len=5000, dtype=jnp.float32):
    """Same values as the torch buffer, stored 2-D (max_len, d_model)."""
    position = jnp.arange(max_len, dtype=jnp.float32)[:, None]
    div_term = jnp.exp(jnp.arange(0, d_model, 2, dtype=jnp.float32)
                       * (-math.log(10000.0) / d_model))
    pe = jnp.zeros((max_len, d_model), jnp.float32)
    pe = pe.at[:, 0::2].set(jnp.sin(position * div_term))
    pe = pe.at[:, 1::2].set(jnp.cos(position * div_term))
    return pe.astype(dtype)        # stored once in the compute dtype


# ------------------------------- kernels -------------------------------------

def _pe_add_kernel(x_ref, pe_ref, o_ref):
    # x_ref: (tl, tb, D); pe_ref: (tl, D) -> broadcast over the batch axis.
    o_ref[...] = x_ref[...] + pe_ref[...][:, None, :]


def _pe_add_flat_kernel(x_ref, pe_ref, o_ref, *, batch):
    # x_ref: (tl, B*D); pe_ref: (tl, D). Replicate pe along the lane axis so
    # tiny batches still use full-width, unmasked vector loads/stores.
    pe = pe_ref[...]
    if batch > 1:
        pe = jnp.concatenate([pe] * batch, axis=-1)
    o_ref[...] = x_ref[...] + pe


# ---------------------------- tile planning -----------------------------------

def _seq_tile(seq_len, rows_budget):
    """Sequence tile: full length, or a multiple of 8 within the byte budget."""
    if rows_budget >= seq_len:
        return seq_len
    if seq_len < 8:
        return seq_len
    return max(8, (int(rows_budget) // 8) * 8)


def positional_encoding_forward(x, pe):
    """out = x + pe[:L] broadcast over batch, for x of shape (L, B, d_model)."""
    L, B, D = x.shape
    max_len, d_pe = pe.shape
    if d_pe != D:
        raise ValueError(f"d_model mismatch: x has {D}, pe has {d_pe}")
    if L > max_len:
        raise ValueError(f"sequence length {L} exceeds pe max_len {max_len}")
    if pe.dtype != x.dtype:
        # Fallback only; pe should be built in the compute dtype at init.
        pe = pe.astype(x.dtype)

    itemsize = jnp.dtype(x.dtype).itemsize
    sublane_min = 8 * (4 // itemsize)          # 8 (f32/i32), 16 (bf16), 32 (i8)
    total_bytes = L * B * D * itemsize

    cost = pl.CostEstimate(flops=L * B * D,
                           bytes_accessed=(2 * L * B * D + L * D) * itemsize,
                           transcendentals=0)

    # ---- small-batch path: view x as (L, B*D) to keep lanes dense -----------
    if B < sublane_min and D % 128 == 0:
        row_bytes = B * D * itemsize
        tl = _seq_tile(L, _TARGET_BLOCK_BYTES // row_bytes)
        if (pl.cdiv(L, tl) == 1 and total_bytes > _MEGACORE_SPLIT_BYTES
                and L >= 16):
            tl = max(8, (pl.cdiv(L, 2) // 8) * 8)   # give both v7x TCs work
        # pe's sublane block dim must be a multiple of 8 or span its full dim.
        pe_in = pe if (tl % 8 == 0 or tl == max_len) else pe[:L]
        out = pl.pallas_call(
            partial(_pe_add_flat_kernel, batch=B),
            out_shape=jax.ShapeDtypeStruct((L, B * D), x.dtype),
            grid=(pl.cdiv(L, tl),),
            in_specs=[pl.BlockSpec((tl, B * D), lambda i: (i, 0)),
                      pl.BlockSpec((tl, D), lambda i: (i, 0))],
            out_specs=pl.BlockSpec((tl, B * D), lambda i: (i, 0)),
            compiler_params=pltpu.CompilerParams(
                dimension_semantics=("parallel",),
                vmem_limit_bytes=_VMEM_LIMIT_BYTES),
            cost_estimate=cost,
        )(x.reshape(L, B * D), pe_in)
        return out.reshape(L, B, D)

    # ---- general path: 3-D blocks (tl, tb, D), pe broadcast over batch ------
    slab_bytes = B * D * itemsize              # one sequence position
    if slab_bytes <= _TARGET_BLOCK_BYTES:
        tb = B
        tl = _seq_tile(L, _TARGET_BLOCK_BYTES // slab_bytes)
    else:
        # One sequence position already exceeds the target: tile the batch too.
        tl = 8 if L >= 8 else L
        tb_budget = _TARGET_BLOCK_BYTES // (tl * D * itemsize)
        tb = B if tb_budget >= B else max(8, (int(tb_budget) // 8) * 8)

    if (pl.cdiv(L, tl) * pl.cdiv(B, tb) == 1
            and total_bytes > _MEGACORE_SPLIT_BYTES):
        if L >= 16:
            tl = max(8, (pl.cdiv(L, 2) // 8) * 8)
        elif B >= 16:
            tb = max(8, (pl.cdiv(B, 2) // 8) * 8)

    pe_in = pe if (tl % 8 == 0 or tl == max_len) else pe[:L]
    return pl.pallas_call(
        _pe_add_kernel,
        out_shape=jax.ShapeDtypeStruct((L, B, D), x.dtype),
        grid=(pl.cdiv(L, tl), pl.cdiv(B, tb)),
        in_specs=[pl.BlockSpec((tl, tb, D), lambda i, j: (i, j, 0)),
                  pl.BlockSpec((tl, D), lambda i, j: (i, 0))],
        out_specs=pl.BlockSpec((tl, tb, D), lambda i, j: (i, j, 0)),
        compiler_params=pltpu.CompilerParams(
            dimension_semantics=("parallel", "parallel"),
            vmem_limit_bytes=_VMEM_LIMIT_BYTES),
        cost_estimate=cost,
    )(x, pe_in)


if __name__ == "__main__":
    # Small shapes consistent with the module: (seq_len, batch, d_model),
    # d_model lane-dense (multiple of 128).
    seq_len, batch, d_model = 16, 2, 128
    max_len = 64

    key = jax.random.PRNGKey(0)
    x = jax.random.normal(key, (seq_len, batch, d_model), jnp.float32)
    pe = make_positional_encoding(d_model, max_len=max_len, dtype=x.dtype)

    # Small-batch (flattened) path.
    out = positional_encoding_forward(x, pe)
    jax.block_until_ready(out)
    ref = x + pe[:seq_len][:, None, :]
    assert out.shape == x.shape
    assert jnp.allclose(out, ref, atol=1e-6, rtol=1e-6)

    # Exercise the general 3-D-block path too (batch >= sublane minimum).
    x2 = jax.random.normal(jax.random.PRNGKey(1), (seq_len, 8, d_model),
                           jnp.float32)
    out2 = positional_encoding_forward(x2, pe)
    jax.block_until_ready(out2)
    ref2 = x2 + pe[:seq_len][:, None, :]
    assert jnp.allclose(out2, ref2, atol=1e-6, rtol=1e-6)

    print("KERNEL_OK")
</pallas_src>

<mosaic_0001>
module attributes {stable_mosaic.version = 11 : i64} {
  func.func @_pe_add_flat_kernel(%arg0: i32, %arg1: memref<16x256xf32, #tpu.memory_space<vmem>>, %arg2: memref<16x128xf32, #tpu.memory_space<vmem>>, %arg3: memref<16x256xf32, #tpu.memory_space<vmem>>) attributes {dimension_semantics = [#tpu.dimension_semantics<parallel>], iteration_bounds = array<i64: 1>, scalar_prefetch = 0 : i64, scratch_operands = 0 : i64, tpu.core_type = #tpu.core_type<tc>, window_params = [{transform_indices = @transform_0, window_bounds = array<i64: 16, 256>}, {transform_indices = @transform_1, window_bounds = array<i64: 16, 128>}, {transform_indices = @transform_2, window_bounds = array<i64: 16, 256>}]} {
    %c0 = arith.constant 0 : index
    %c0_0 = arith.constant 0 : index
    %0 = vector.load %arg2[%c0, %c0_0] : memref<16x128xf32, #tpu.memory_space<vmem>>, vector<16x128xf32>
    %1 = tpu.concatenate %0, %0 in 1 : vector<16x128xf32>, vector<16x128xf32> -> vector<16x256xf32>
    %c0_1 = arith.constant 0 : index
    %c0_2 = arith.constant 0 : index
    %2 = vector.load %arg1[%c0_1, %c0_2] : memref<16x256xf32, #tpu.memory_space<vmem>>, vector<16x256xf32>
    %3 = arith.addf %2, %1 : vector<16x256xf32>
    %c0_3 = arith.constant 0 : index
    %c0_4 = arith.constant 0 : index
    %4 = vector.load %arg3[%c0_3, %c0_4] : memref<16x256xf32, #tpu.memory_space<vmem>>, vector<16x256xf32>
    tpu.vector_store %arg3[%c0_3, %c0_4], %3 {strides = array<i32>} : memref<16x256xf32, #tpu.memory_space<vmem>>, vector<16x256xf32>,
    return
  }
  func.func @transform_0(%arg0: i32) -> (i32, i32) {
    %c0_i32 = arith.constant 0 : i32
    %c0_i32_0 = arith.constant 0 : i32
    return %arg0, %c0_i32 : i32, i32
  }
  func.func @transform_1(%arg0: i32) -> (i32, i32) {
    %c0_i32 = arith.constant 0 : i32
    %c0_i32_0 = arith.constant 0 : i32
    return %arg0, %c0_i32 : i32, i32
  }
  func.func @transform_2(%arg0: i32) -> (i32, i32) {
    %c0_i32 = arith.constant 0 : i32
    %c0_i32_0 = arith.constant 0 : i32
    return %arg0, %c0_i32 : i32, i32
  }
}

</mosaic_0001>

<bundles_post_ra>
// kernel: tpu_custom_call.1
= control target key start
LH: loop header
LB: loop body
LE: loop exit
PB: predicated region body
PF: predicated region fallthrough
CT: control target
= control target key end

     0   :  { %7 = vsyncpa [#allocation3], 0  ;;  %s200_s0 = inlined_call_operand.hbm [shape: f32[16,256], index: 0, kind: input, shape index: {}]   ;;  %s201_s1 = inlined_call_operand.hbm [shape: f32[64,128], index: 1, kind: input, shape index: {}]   ;;  %s202_s2 = inlined_call_operand.hbm [shape: f32[16,256], index: 2, kind: output, shape index: {}]  }
   0x1   :  { %8 = vsyncpa [#allocation6], 0 }
   0x2   :  { %9 = vsyncpa [#allocation4], 0  ;;  %s14_s11 = sshll.u32 %s200_s0, 4  ;;  %s163_s12 = smov [#allocation2]   ;;  %s15_s11 = int_to_ptr.hbm [resolvable:$true] %s14_s11 }
   0x3   :  { %s16_s13 = sshll.u32 %s163_s12, 4  ;;  %s27_s16 = sshll.u32 %s201_s1, 4  ;;  %s17_s13 = int_to_ptr.vmem [resolvable:$true] %s16_s13  ;;  %s28_s16 = int_to_ptr.hbm [resolvable:$true] %s27_s16 }
   0x4   :  { %s164_s17 = smov 256   ;;  %s165_s18 = smov 16  }
   0x5   :  { %22 = dma.hbm_to_vmem [thread:$0]  %s15_s11, 512, %s17_s13, [#allocation3], %s164_s17, %s164_s17, %s165_s18  }
   0x6   :  { %s166_s19 = smov [#allocation5]   ;;  %s167_s21 = smov 128  }
   0x7   :  { %s29_s20 = sshll.u32 %s166_s19, 4  ;;  %s168_s0 = smov 8   ;;  %s30_s20 = int_to_ptr.vmem [resolvable:$true] %s29_s20 }
   0x8   :  { %35 = dma.hbm_to_vmem [thread:$0]  %s28_s16, 256, %s30_s20, [#allocation6], %s167_s21, %s167_s21, %s168_s0  }
   0x9   :  { %157 = dma.done.wait [#allocation3], 512  }
   0xa   :  { %158 = vsyncadd [#allocation3], 4294966784 }
   0xb   :  { %159 = dma.done.wait [#allocation6], 256  }
   0xc   :  { %160 = vsyncadd [#allocation6], 4294967040  ;;  %v44_v0 = vld [vmem:[#allocation5] sm:$0xff]  ;;  %v47_v2 = vld [vmem:[#allocation2 + $0x8] sm:$0xff]  ;;  %s169_s1 = smov [#allocation7]   ;;  %s64_s25 = sshll.u32 %s202_s2, 4  ;;  %s65_s25 = int_to_ptr.hbm [resolvable:$true] %s64_s25 }
   0xd   :  { %v46_v1 = vld [vmem:[#allocation2] sm:$0xff]  ;;  %v51_v4 = vadd.f32 %v47_v2, %v44_v0  ;;  %v45_v5 = vld [vmem:[#allocation5 + $0x8] sm:$0xff]  ;;  %v48_v6 = vld [vmem:[#allocation2 + $0x10] sm:$0xff]  ;;  %s62_s22 = sshll.u32 %s169_s1, 4  ;;  %s63_s22 = int_to_ptr.vmem [resolvable:$true] %s62_s22 }
   0xe   :  { %v50_v3 = vadd.f32 %v46_v1, %v44_v0  ;;  %v49_v7 = vld [vmem:[#allocation2 + $0x18] sm:$0xff]  ;;  %v52_v8 = vadd.f32 %v48_v6, %v45_v5 }
   0xf   :  { %v53_v9 = vadd.f32 %v49_v7, %v45_v5  ;;  %55 = vst [vmem:[#allocation7 + $0x8] sm:$0xff] %v51_v4 }
  0x10   :  { %54 = vst [vmem:[#allocation7] sm:$0xff] %v50_v3 }
  0x11   :  { %56 = vst [vmem:[#allocation7 + $0x10] sm:$0xff] %v52_v8 }
  0x12   :  { %57 = vst [vmem:[#allocation7 + $0x18] sm:$0xff] %v53_v9 }
  0x13   :  { %70 = dma.vmem_to_hbm [thread:$0]  %s63_s22, 512, %s65_s25, [#allocation4], %s164_s17, %s164_s17, %s165_s18  }
  0x14   :  { %161 = dma.done.wait [#allocation4], 512  }
  0x15   :  { %162 = vsyncadd [#allocation4], 4294966784 }
  0x16   :  { %75 = vsyncpa [#allocation3], 1 }
  0x17   :  { %76 = vsyncpa [#allocation6], 1 }
  0x18   :  { %77 = vsyncpa [#allocation4], 1 }

</bundles_post_ra>
